<compile_context>
chip_gen: v6e
topology: v6e:2x2x1
jax: 0.10.0
libtpu: 0.0.40
codegen_flags: <defaults>
</compile_context>

<pallas_src>
import functools

import jax
import jax.numpy as jnp
from jax import lax
from jax.experimental import pallas as pl
from jax.experimental.pallas import tpu as pltpu


def _conv_bn_relu_kernel(x0_ref, x1_ref, x2_ref, w_ref, scale_ref, shift_ref,
                         o_ref, *, Wp, S):
    # x*_ref : (C_in, Spad)  three consecutive padded depth slices (kd = 0,1,2)
    # w_ref  : (27, C_out, C_in)  taps ordered (kd, kh, kw)
    # scale_ref / shift_ref : (C_out, 1)  folded conv-bias + BatchNorm affine
    # o_ref  : (C_out, S)   one flattened padded output plane, S = (H+2)*(W+2)
    C_out = o_ref.shape[0]
    acc = jnp.zeros((C_out, S), jnp.float32)
    for kd, x_ref in enumerate((x0_ref, x1_ref, x2_ref)):
        xv = x_ref[...]                                  # (C_in, Spad)
        for kh in range(3):
            for kw in range(3):
                off = kh * Wp + kw                       # static lane offset
                xs = xv[:, off:off + S]                  # (C_in, S)
                k = (kd * 3 + kh) * 3 + kw
                acc += jnp.dot(w_ref[k], xs,
                               preferred_element_type=jnp.float32)
    y = acc * scale_ref[...] + shift_ref[...]            # fused BN (+ bias)
    o_ref[...] = jnp.maximum(y, 0.0).astype(o_ref.dtype) # fused ReLU


def conv3x3x3_bn_relu(x, weight, bias, gamma, beta, mean, var, *, eps=1e-5):
    """One fused Conv3d(kernel=3, padding=1) -> BatchNorm3d(eval) -> ReLU.

    x: (N, C_in, D, H, W); weight: (C_out, C_in, 3, 3, 3); others: (C_out,)
    returns: (N, C_out, D, H, W) float32
    """
    N, C_in, D, H, W = x.shape
    C_out = weight.shape[0]
    Dp, Hp, Wp = D + 2, H + 2, W + 2
    S = Hp * Wp                      # flattened padded plane (lane axis)
    halo = Wp + 1                    # max |(kh-1)*Wp + (kw-1)|
    Spad = S + 2 * halo

    # Layout plumbing (wrapper/XLA side): zero-pad D/H/W, put channels on
    # sublanes, flatten the padded plane onto lanes, add the lane halo.
    xp = jnp.pad(x, ((0, 0), (0, 0), (1, 1), (1, 1), (1, 1)))
    xp = jnp.transpose(xp, (0, 2, 1, 3, 4))              # (N, Dp, C_in, Hp, Wp)
    xf = xp.reshape(N, Dp, C_in, S).astype(jnp.float32)
    xf = jnp.pad(xf, ((0, 0), (0, 0), (0, 0), (halo, halo)))   # (N,Dp,C_in,Spad)

    # Weight taps: (C_out, C_in, 3,3,3) -> (27, C_out, C_in), ordered (kd,kh,kw)
    w_taps = jnp.transpose(weight, (2, 3, 4, 0, 1)).reshape(27, C_out, C_in)
    w_taps = w_taps.astype(jnp.float32)

    # Fold conv bias + eval-mode BatchNorm into per-channel scale/shift.
    # TODO(synk): training-mode BatchNorm (batch statistics) not implemented;
    # this uses running statistics (PyTorch .eval() semantics).
    scale = (gamma * lax.rsqrt(var + eps)).astype(jnp.float32)
    shift = (scale * (bias - mean) + beta).astype(jnp.float32)
    scale = scale.reshape(C_out, 1)
    shift = shift.reshape(C_out, 1)

    def x_spec(kd):
        return pl.BlockSpec((None, None, C_in, Spad),
                            lambda n, d, kd=kd: (n, d + kd, 0, 0))

    flops = 2 * N * D * 27 * C_in * C_out * S
    bytes_accessed = 4 * (N * D * 3 * C_in * Spad + N * D * C_out * S
                          + 27 * C_out * C_in + 2 * C_out)

    out = pl.pallas_call(
        functools.partial(_conv_bn_relu_kernel, Wp=Wp, S=S),
        out_shape=jax.ShapeDtypeStruct((N, D, C_out, S), jnp.float32),
        grid_spec=pltpu.PrefetchScalarGridSpec(
            num_scalar_prefetch=0,
            grid=(N, D),
            in_specs=[
                x_spec(0), x_spec(1), x_spec(2),
                pl.BlockSpec((27, C_out, C_in), lambda n, d: (0, 0, 0)),
                pl.BlockSpec((C_out, 1), lambda n, d: (0, 0)),
                pl.BlockSpec((C_out, 1), lambda n, d: (0, 0)),
            ],
            out_specs=pl.BlockSpec((None, None, C_out, S),
                                   lambda n, d: (n, d, 0, 0)),
        ),
        compiler_params=pltpu.CompilerParams(
            dimension_semantics=("parallel", "parallel")),
        cost_estimate=pl.CostEstimate(flops=flops, transcendentals=0,
                                      bytes_accessed=bytes_accessed),
    )(xf, xf, xf, w_taps, scale, shift)

    # Drop the padded border of the plane and restore NCDHW.
    out = out.reshape(N, D, C_out, Hp, Wp)[:, :, :, 1:Hp - 1, 1:Wp - 1]
    return jnp.transpose(out, (0, 2, 1, 3, 4))           # (N, C_out, D, H, W)


def double_conv_forward(x, params):
    """(conv => BN => ReLU) * 2 — forward pass of `double_conv`."""
    y = conv3x3x3_bn_relu(x, params["w1"], params["b1"], params["g1"],
                          params["be1"], params["m1"], params["v1"])
    y = conv3x3x3_bn_relu(y, params["w2"], params["b2"], params["g2"],
                          params["be2"], params["m2"], params["v2"])
    return y


if __name__ == "__main__":
    key = jax.random.PRNGKey(0)
    ks = jax.random.split(key, 12)

    N, in_ch, out_ch, D, H, W = 2, 4, 8, 4, 8, 8
    x = jax.random.normal(ks[0], (N, in_ch, D, H, W), dtype=jnp.float32)

    params = {
        "w1": jax.random.normal(ks[1], (out_ch, in_ch, 3, 3, 3), jnp.float32) * 0.1,
        "b1": jax.random.normal(ks[2], (out_ch,), jnp.float32) * 0.1,
        "g1": 1.0 + 0.1 * jax.random.normal(ks[3], (out_ch,), jnp.float32),
        "be1": 0.1 * jax.random.normal(ks[4], (out_ch,), jnp.float32),
        "m1": 0.1 * jax.random.normal(ks[5], (out_ch,), jnp.float32),
        "v1": 1.0 + 0.1 * jnp.abs(jax.random.normal(ks[6], (out_ch,), jnp.float32)),
        "w2": jax.random.normal(ks[7], (out_ch, out_ch, 3, 3, 3), jnp.float32) * 0.1,
        "b2": jax.random.normal(ks[8], (out_ch,), jnp.float32) * 0.1,
        "g2": 1.0 + 0.1 * jax.random.normal(ks[9], (out_ch,), jnp.float32),
        "be2": 0.1 * jax.random.normal(ks[10], (out_ch,), jnp.float32),
        "m2": 0.1 * jax.random.normal(ks[11], (out_ch,), jnp.float32),
        "v2": jnp.ones((out_ch,), jnp.float32),
    }

    y = double_conv_forward(x, params)
    jax.block_until_ready(y)

    # Pure-JAX reference: conv -> eval-mode BN -> ReLU, twice.
    def ref_layer(xi, w, b, g, be, m, v, eps=1e-5):
        yr = lax.conv_general_dilated(
            xi, w, window_strides=(1, 1, 1), padding="SAME",
            dimension_numbers=("NCDHW", "OIDHW", "NCDHW"),
            precision=lax.Precision.HIGHEST)
        yr = yr + b.reshape(1, -1, 1, 1, 1)
        yr = (yr - m.reshape(1, -1, 1, 1, 1)) / jnp.sqrt(
            v.reshape(1, -1, 1, 1, 1) + eps)
        yr = yr * g.reshape(1, -1, 1, 1, 1) + be.reshape(1, -1, 1, 1, 1)
        return jnp.maximum(yr, 0.0)

    y_ref = ref_layer(x, params["w1"], params["b1"], params["g1"],
                      params["be1"], params["m1"], params["v1"])
    y_ref = ref_layer(y_ref, params["w2"], params["b2"], params["g2"],
                      params["be2"], params["m2"], params["v2"])

    assert y.shape == (N, out_ch, D, H, W)
    err = float(jnp.max(jnp.abs(y - y_ref)))
    assert jnp.allclose(y, y_ref, atol=2e-3, rtol=2e-3), err

    print("KERNEL_OK")
</pallas_src>

<mosaic_0001>
module attributes {stable_mosaic.version = 11 : i64} {
  func.func @_conv_bn_relu_kernel(%arg0: i32, %arg1: i32, %arg2: memref<1x1x4x122xf32, #tpu.memory_space<vmem>>, %arg3: memref<1x1x4x122xf32, #tpu.memory_space<vmem>>, %arg4: memref<1x1x4x122xf32, #tpu.memory_space<vmem>>, %arg5: memref<27x8x4xf32, #tpu.memory_space<vmem>>, %arg6: memref<8x1xf32, #tpu.memory_space<vmem>>, %arg7: memref<8x1xf32, #tpu.memory_space<vmem>>, %arg8: memref<1x1x8x100xf32, #tpu.memory_space<vmem>>) attributes {dimension_semantics = [#tpu.dimension_semantics<parallel>, #tpu.dimension_semantics<parallel>], iteration_bounds = array<i64: 2, 4>, scalar_prefetch = 0 : i64, scratch_operands = 0 : i64, tpu.core_type = #tpu.core_type<tc>, window_params = [{transform_indices = @transform_0, window_bounds = array<i64: 1, 1, 4, 122>}, {transform_indices = @transform_1, window_bounds = array<i64: 1, 1, 4, 122>}, {transform_indices = @transform_2, window_bounds = array<i64: 1, 1, 4, 122>}, {pipeline_mode = #tpu.pipeline_mode<synchronous>, transform_indices = @transform_3, window_bounds = array<i64: 27, 8, 4>}, {pipeline_mode = #tpu.pipeline_mode<synchronous>, transform_indices = @transform_4, window_bounds = array<i64: 8, 1>}, {pipeline_mode = #tpu.pipeline_mode<synchronous>, transform_indices = @transform_5, window_bounds = array<i64: 8, 1>}, {transform_indices = @transform_6, window_bounds = array<i64: 1, 1, 8, 100>}]} {
    %cst = arith.constant 0.000000e+00 : f32
    %0 = vector.broadcast %cst : f32 to vector<8x100xf32>
    %c0 = arith.constant 0 : index
    %c0_0 = arith.constant 0 : index
    %c0_1 = arith.constant 0 : index
    %c0_2 = arith.constant 0 : index
    %1 = vector.load %arg2[%c0, %c0_0, %c0_1, %c0_2] : memref<1x1x4x122xf32, #tpu.memory_space<vmem>>, vector<1x1x4x122xf32>
    %2 = vector.shape_cast %1 : vector<1x1x4x122xf32> to vector<4x122xf32>
    %3 = vector.extract_strided_slice %2 {offsets = [0, 0], sizes = [4, 100], strides = [1, 1]} : vector<4x122xf32> to vector<4x100xf32>
    %c0_3 = arith.constant 0 : index
    %c0_4 = arith.constant 0 : index
    %c0_5 = arith.constant 0 : index
    %4 = vector.load %arg5[%c0_3, %c0_4, %c0_5] : memref<27x8x4xf32, #tpu.memory_space<vmem>>, vector<1x8x4xf32>
    %5 = vector.shape_cast %4 : vector<1x8x4xf32> to vector<8x4xf32>
    %cst_6 = arith.constant dense<0.000000e+00> : vector<8x100xf32>
    %6 = tpu.matmul %5, %3, %cst_6 {dimension_numbers = #tpu.dot_dimension_numbers<[1], [0], [0], [1], [0, 0, 1, 1], [], []>} : vector<8x4xf32>, vector<4x100xf32>, vector<8x100xf32> -> vector<8x100xf32>
    %7 = arith.addf %0, %6 : vector<8x100xf32>
    %8 = vector.extract_strided_slice %2 {offsets = [0, 1], sizes = [4, 100], strides = [1, 1]} : vector<4x122xf32> to vector<4x100xf32>
    %c1 = arith.constant 1 : index
    %c0_7 = arith.constant 0 : index
    %c0_8 = arith.constant 0 : index
    %9 = vector.load %arg5[%c1, %c0_7, %c0_8] : memref<27x8x4xf32, #tpu.memory_space<vmem>>, vector<1x8x4xf32>
    %10 = vector.shape_cast %9 : vector<1x8x4xf32> to vector<8x4xf32>
    %cst_9 = arith.constant dense<0.000000e+00> : vector<8x100xf32>
    %11 = tpu.matmul %10, %8, %cst_9 {dimension_numbers = #tpu.dot_dimension_numbers<[1], [0], [0], [1], [0, 0, 1, 1], [], []>} : vector<8x4xf32>, vector<4x100xf32>, vector<8x100xf32> -> vector<8x100xf32>
    %12 = arith.addf %7, %11 : vector<8x100xf32>
    %13 = vector.extract_strided_slice %2 {offsets = [0, 2], sizes = [4, 100], strides = [1, 1]} : vector<4x122xf32> to vector<4x100xf32>
    %c2 = arith.constant 2 : index
    %c0_10 = arith.constant 0 : index
    %c0_11 = arith.constant 0 : index
    %14 = vector.load %arg5[%c2, %c0_10, %c0_11] : memref<27x8x4xf32, #tpu.memory_space<vmem>>, vector<1x8x4xf32>
    %15 = vector.shape_cast %14 : vector<1x8x4xf32> to vector<8x4xf32>
    %cst_12 = arith.constant dense<0.000000e+00> : vector<8x100xf32>
    %16 = tpu.matmul %15, %13, %cst_12 {dimension_numbers = #tpu.dot_dimension_numbers<[1], [0], [0], [1], [0, 0, 1, 1], [], []>} : vector<8x4xf32>, vector<4x100xf32>, vector<8x100xf32> -> vector<8x100xf32>
    %17 = arith.addf %12, %16 : vector<8x100xf32>
    %18 = vector.extract_strided_slice %2 {offsets = [0, 10], sizes = [4, 100], strides = [1, 1]} : vector<4x122xf32> to vector<4x100xf32>
    %c3 = arith.constant 3 : index
    %c0_13 = arith.constant 0 : index
    %c0_14 = arith.constant 0 : index
    %19 = vector.load %arg5[%c3, %c0_13, %c0_14] : memref<27x8x4xf32, #tpu.memory_space<vmem>>, vector<1x8x4xf32>
    %20 = vector.shape_cast %19 : vector<1x8x4xf32> to vector<8x4xf32>
    %cst_15 = arith.constant dense<0.000000e+00> : vector<8x100xf32>
    %21 = tpu.matmul %20, %18, %cst_15 {dimension_numbers = #tpu.dot_dimension_numbers<[1], [0], [0], [1], [0, 0, 1, 1], [], []>} : vector<8x4xf32>, vector<4x100xf32>, vector<8x100xf32> -> vector<8x100xf32>
    %22 = arith.addf %17, %21 : vector<8x100xf32>
    %23 = vector.extract_strided_slice %2 {offsets = [0, 11], sizes = [4, 100], strides = [1, 1]} : vector<4x122xf32> to vector<4x100xf32>
    %c4 = arith.constant 4 : index
    %c0_16 = arith.constant 0 : index
    %c0_17 = arith.constant 0 : index
    %24 = vector.load %arg5[%c4, %c0_16, %c0_17] : memref<27x8x4xf32, #tpu.memory_space<vmem>>, vector<1x8x4xf32>
    %25 = vector.shape_cast %24 : vector<1x8x4xf32> to vector<8x4xf32>
    %cst_18 = arith.constant dense<0.000000e+00> : vector<8x100xf32>
    %26 = tpu.matmul %25, %23, %cst_18 {dimension_numbers = #tpu.dot_dimension_numbers<[1], [0], [0], [1], [0, 0, 1, 1], [], []>} : vector<8x4xf32>, vector<4x100xf32>, vector<8x100xf32> -> vector<8x100xf32>
    %27 = arith.addf %22, %26 : vector<8x100xf32>
    %28 = vector.extract_strided_slice %2 {offsets = [0, 12], sizes = [4, 100], strides = [1, 1]} : vector<4x122xf32> to vector<4x100xf32>
    %c5 = arith.constant 5 : index
    %c0_19 = arith.constant 0 : index
    %c0_20 = arith.constant 0 : index
    %29 = vector.load %arg5[%c5, %c0_19, %c0_20] : memref<27x8x4xf32, #tpu.memory_space<vmem>>, vector<1x8x4xf32>
    %30 = vector.shape_cast %29 : vector<1x8x4xf32> to vector<8x4xf32>
    %cst_21 = arith.constant dense<0.000000e+00> : vector<8x100xf32>
    %31 = tpu.matmul %30, %28, %cst_21 {dimension_numbers = #tpu.dot_dimension_numbers<[1], [0], [0], [1], [0, 0, 1, 1], [], []>} : vector<8x4xf32>, vector<4x100xf32>, vector<8x100xf32> -> vector<8x100xf32>
    %32 = arith.addf %27, %31 : vector<8x100xf32>
    %33 = vector.extract_strided_slice %2 {offsets = [0, 20], sizes = [4, 100], strides = [1, 1]} : vector<4x122xf32> to vector<4x100xf32>
    %c6 = arith.constant 6 : index
    %c0_22 = arith.constant 0 : index
    %c0_23 = arith.constant 0 : index
    %34 = vector.load %arg5[%c6, %c0_22, %c0_23] : memref<27x8x4xf32, #tpu.memory_space<vmem>>, vector<1x8x4xf32>
    %35 = vector.shape_cast %34 : vector<1x8x4xf32> to vector<8x4xf32>
    %cst_24 = arith.constant dense<0.000000e+00> : vector<8x100xf32>
    %36 = tpu.matmul %35, %33, %cst_24 {dimension_numbers = #tpu.dot_dimension_numbers<[1], [0], [0], [1], [0, 0, 1, 1], [], []>} : vector<8x4xf32>, vector<4x100xf32>, vector<8x100xf32> -> vector<8x100xf32>
    %37 = arith.addf %32, %36 : vector<8x100xf32>
    %38 = vector.extract_strided_slice %2 {offsets = [0, 21], sizes = [4, 100], strides = [1, 1]} : vector<4x122xf32> to vector<4x100xf32>
    %c7 = arith.constant 7 : index
    %c0_25 = arith.constant 0 : index
    %c0_26 = arith.constant 0 : index
    %39 = vector.load %arg5[%c7, %c0_25, %c0_26] : memref<27x8x4xf32, #tpu.memory_space<vmem>>, vector<1x8x4xf32>
    %40 = vector.shape_cast %39 : vector<1x8x4xf32> to vector<8x4xf32>
    %cst_27 = arith.constant dense<0.000000e+00> : vector<8x100xf32>
    %41 = tpu.matmul %40, %38, %cst_27 {dimension_numbers = #tpu.dot_dimension_numbers<[1], [0], [0], [1], [0, 0, 1, 1], [], []>} : vector<8x4xf32>, vector<4x100xf32>, vector<8x100xf32> -> vector<8x100xf32>
    %42 = arith.addf %37, %41 : vector<8x100xf32>
    %43 = vector.extract_strided_slice %2 {offsets = [0, 22], sizes = [4, 100], strides = [1, 1]} : vector<4x122xf32> to vector<4x100xf32>
    %c8 = arith.constant 8 : index
    %c0_28 = arith.constant 0 : index
    %c0_29 = arith.constant 0 : index
    %44 = vector.load %arg5[%c8, %c0_28, %c0_29] : memref<27x8x4xf32, #tpu.memory_space<vmem>>, vector<1x8x4xf32>
    %45 = vector.shape_cast %44 : vector<1x8x4xf32> to vector<8x4xf32>
    %cst_30 = arith.constant dense<0.000000e+00> : vector<8x100xf32>
    %46 = tpu.matmul %45, %43, %cst_30 {dimension_numbers = #tpu.dot_dimension_numbers<[1], [0], [0], [1], [0, 0, 1, 1], [], []>} : vector<8x4xf32>, vector<4x100xf32>, vector<8x100xf32> -> vector<8x100xf32>
    %47 = arith.addf %42, %46 : vector<8x100xf32>
    %c0_31 = arith.constant 0 : index
    %c0_32 = arith.constant 0 : index
    %c0_33 = arith.constant 0 : index
    %c0_34 = arith.constant 0 : index
    %48 = vector.load %arg3[%c0_31, %c0_32, %c0_33, %c0_34] : memref<1x1x4x122xf32, #tpu.memory_space<vmem>>, vector<1x1x4x122xf32>
    %49 = vector.shape_cast %48 : vector<1x1x4x122xf32> to vector<4x122xf32>
    %50 = vector.extract_strided_slice %49 {offsets = [0, 0], sizes = [4, 100], strides = [1, 1]} : vector<4x122xf32> to vector<4x100xf32>
    %c9 = arith.constant 9 : index
    %c0_35 = arith.constant 0 : index
    %c0_36 = arith.constant 0 : index
    %51 = vector.load %arg5[%c9, %c0_35, %c0_36] : memref<27x8x4xf32, #tpu.memory_space<vmem>>, vector<1x8x4xf32>
    %52 = vector.shape_cast %51 : vector<1x8x4xf32> to vector<8x4xf32>
    %cst_37 = arith.constant dense<0.000000e+00> : vector<8x100xf32>
    %53 = tpu.matmul %52, %50, %cst_37 {dimension_numbers = #tpu.dot_dimension_numbers<[1], [0], [0], [1], [0, 0, 1, 1], [], []>} : vector<8x4xf32>, vector<4x100xf32>, vector<8x100xf32> -> vector<8x100xf32>
    %54 = arith.addf %47, %53 : vector<8x100xf32>
    %55 = vector.extract_strided_slice %49 {offsets = [0, 1], sizes = [4, 100], strides = [1, 1]} : vector<4x122xf32> to vector<4x100xf32>
    %c10 = arith.constant 10 : index
    %c0_38 = arith.constant 0 : index
    %c0_39 = arith.constant 0 : index
    %56 = vector.load %arg5[%c10, %c0_38, %c0_39] : memref<27x8x4xf32, #tpu.memory_space<vmem>>, vector<1x8x4xf32>
    %57 = vector.shape_cast %56 : vector<1x8x4xf32> to vector<8x4xf32>
    %cst_40 = arith.constant dense<0.000000e+00> : vector<8x100xf32>
    %58 = tpu.matmul %57, %55, %cst_40 {dimension_numbers = #tpu.dot_dimension_numbers<[1], [0], [0], [1], [0, 0, 1, 1], [], []>} : vector<8x4xf32>, vector<4x100xf32>, vector<8x100xf32> -> vector<8x100xf32>
    %59 = arith.addf %54, %58 : vector<8x100xf32>
    %60 = vector.extract_strided_slice %49 {offsets = [0, 2], sizes = [4, 100], strides = [1, 1]} : vector<4x122xf32> to vector<4x100xf32>
    %c11 = arith.constant 11 : index
    %c0_41 = arith.constant 0 : index
    %c0_42 = arith.constant 0 : index
    %61 = vector.load %arg5[%c11, %c0_41, %c0_42] : memref<27x8x4xf32, #tpu.memory_space<vmem>>, vector<1x8x4xf32>
    %62 = vector.shape_cast %61 : vector<1x8x4xf32> to vector<8x4xf32>
    %cst_43 = arith.constant dense<0.000000e+00> : vector<8x100xf32>
    %63 = tpu.matmul %62, %60, %cst_43 {dimension_numbers = #tpu.dot_dimension_numbers<[1], [0], [0], [1], [0, 0, 1, 1], [], []>} : vector<8x4xf32>, vector<4x100xf32>, vector<8x100xf32> -> vector<8x100xf32>
    %64 = arith.addf %59, %63 : vector<8x100xf32>
    %65 = vector.extract_strided_slice %49 {offsets = [0, 10], sizes = [4, 100], strides = [1, 1]} : vector<4x122xf32> to vector<4x100xf32>
    %c12 = arith.constant 12 : index
    %c0_44 = arith.constant 0 : index
    %c0_45 = arith.constant 0 : index
    %66 = vector.load %arg5[%c12, %c0_44, %c0_45] : memref<27x8x4xf32, #tpu.memory_space<vmem>>, vector<1x8x4xf32>
    %67 = vector.shape_cast %66 : vector<1x8x4xf32> to vector<8x4xf32>
    %cst_46 = arith.constant dense<0.000000e+00> : vector<8x100xf32>
    %68 = tpu.matmul %67, %65, %cst_46 {dimension_numbers = #tpu.dot_dimension_numbers<[1], [0], [0], [1], [0, 0, 1, 1], [], []>} : vector<8x4xf32>, vector<4x100xf32>, vector<8x100xf32> -> vector<8x100xf32>
    %69 = arith.addf %64, %68 : vector<8x100xf32>
    %70 = vector.extract_strided_slice %49 {offsets = [0, 11], sizes = [4, 100], strides = [1, 1]} : vector<4x122xf32> to vector<4x100xf32>
    %c13 = arith.constant 13 : index
    %c0_47 = arith.constant 0 : index
    %c0_48 = arith.constant 0 : index
    %71 = vector.load %arg5[%c13, %c0_47, %c0_48] : memref<27x8x4xf32, #tpu.memory_space<vmem>>, vector<1x8x4xf32>
    %72 = vector.shape_cast %71 : vector<1x8x4xf32> to vector<8x4xf32>
    %cst_49 = arith.constant dense<0.000000e+00> : vector<8x100xf32>
    %73 = tpu.matmul %72, %70, %cst_49 {dimension_numbers = #tpu.dot_dimension_numbers<[1], [0], [0], [1], [0, 0, 1, 1], [], []>} : vector<8x4xf32>, vector<4x100xf32>, vector<8x100xf32> -> vector<8x100xf32>
    %74 = arith.addf %69, %73 : vector<8x100xf32>
    %75 = vector.extract_strided_slice %49 {offsets = [0, 12], sizes = [4, 100], strides = [1, 1]} : vector<4x122xf32> to vector<4x100xf32>
    %c14 = arith.constant 14 : index
    %c0_50 = arith.constant 0 : index
    %c0_51 = arith.constant 0 : index
    %76 = vector.load %arg5[%c14, %c0_50, %c0_51] : memref<27x8x4xf32, #tpu.memory_space<vmem>>, vector<1x8x4xf32>
    %77 = vector.shape_cast %76 : vector<1x8x4xf32> to vector<8x4xf32>
    %cst_52 = arith.constant dense<0.000000e+00> : vector<8x100xf32>
    %78 = tpu.matmul %77, %75, %cst_52 {dimension_numbers = #tpu.dot_dimension_numbers<[1], [0], [0], [1], [0, 0, 1, 1], [], []>} : vector<8x4xf32>, vector<4x100xf32>, vector<8x100xf32> -> vector<8x100xf32>
    %79 = arith.addf %74, %78 : vector<8x100xf32>
    %80 = vector.extract_strided_slice %49 {offsets = [0, 20], sizes = [4, 100], strides = [1, 1]} : vector<4x122xf32> to vector<4x100xf32>
    %c15 = arith.constant 15 : index
    %c0_53 = arith.constant 0 : index
    %c0_54 = arith.constant 0 : index
    %81 = vector.load %arg5[%c15, %c0_53, %c0_54] : memref<27x8x4xf32, #tpu.memory_space<vmem>>, vector<1x8x4xf32>
    %82 = vector.shape_cast %81 : vector<1x8x4xf32> to vector<8x4xf32>
    %cst_55 = arith.constant dense<0.000000e+00> : vector<8x100xf32>
    %83 = tpu.matmul %82, %80, %cst_55 {dimension_numbers = #tpu.dot_dimension_numbers<[1], [0], [0], [1], [0, 0, 1, 1], [], []>} : vector<8x4xf32>, vector<4x100xf32>, vector<8x100xf32> -> vector<8x100xf32>
    %84 = arith.addf %79, %83 : vector<8x100xf32>
    %85 = vector.extract_strided_slice %49 {offsets = [0, 21], sizes = [4, 100], strides = [1, 1]} : vector<4x122xf32> to vector<4x100xf32>
    %c16 = arith.constant 16 : index
    %c0_56 = arith.constant 0 : index
    %c0_57 = arith.constant 0 : index
    %86 = vector.load %arg5[%c16, %c0_56, %c0_57] : memref<27x8x4xf32, #tpu.memory_space<vmem>>, vector<1x8x4xf32>
    %87 = vector.shape_cast %86 : vector<1x8x4xf32> to vector<8x4xf32>
    %cst_58 = arith.constant dense<0.000000e+00> : vector<8x100xf32>
    %88 = tpu.matmul %87, %85, %cst_58 {dimension_numbers = #tpu.dot_dimension_numbers<[1], [0], [0], [1], [0, 0, 1, 1], [], []>} : vector<8x4xf32>, vector<4x100xf32>, vector<8x100xf32> -> vector<8x100xf32>
    %89 = arith.addf %84, %88 : vector<8x100xf32>
    %90 = vector.extract_strided_slice %49 {offsets = [0, 22], sizes = [4, 100], strides = [1, 1]} : vector<4x122xf32> to vector<4x100xf32>
    %c17 = arith.constant 17 : index
    %c0_59 = arith.constant 0 : index
    %c0_60 = arith.constant 0 : index
    %91 = vector.load %arg5[%c17, %c0_59, %c0_60] : memref<27x8x4xf32, #tpu.memory_space<vmem>>, vector<1x8x4xf32>
    %92 = vector.shape_cast %91 : vector<1x8x4xf32> to vector<8x4xf32>
    %cst_61 = arith.constant dense<0.000000e+00> : vector<8x100xf32>
    %93 = tpu.matmul %92, %90, %cst_61 {dimension_numbers = #tpu.dot_dimension_numbers<[1], [0], [0], [1], [0, 0, 1, 1], [], []>} : vector<8x4xf32>, vector<4x100xf32>, vector<8x100xf32> -> vector<8x100xf32>
    %94 = arith.addf %89, %93 : vector<8x100xf32>
    %c0_62 = arith.constant 0 : index
    %c0_63 = arith.constant 0 : index
    %c0_64 = arith.constant 0 : index
    %c0_65 = arith.constant 0 : index
    %95 = vector.load %arg4[%c0_62, %c0_63, %c0_64, %c0_65] : memref<1x1x4x122xf32, #tpu.memory_space<vmem>>, vector<1x1x4x122xf32>
    %96 = vector.shape_cast %95 : vector<1x1x4x122xf32> to vector<4x122xf32>
    %97 = vector.extract_strided_slice %96 {offsets = [0, 0], sizes = [4, 100], strides = [1, 1]} : vector<4x122xf32> to vector<4x100xf32>
    %c18 = arith.constant 18 : index
    %c0_66 = arith.constant 0 : index
    %c0_67 = arith.constant 0 : index
    %98 = vector.load %arg5[%c18, %c0_66, %c0_67] : memref<27x8x4xf32, #tpu.memory_space<vmem>>, vector<1x8x4xf32>
    %99 = vector.shape_cast %98 : vector<1x8x4xf32> to vector<8x4xf32>
    %cst_68 = arith.constant dense<0.000000e+00> : vector<8x100xf32>
    %100 = tpu.matmul %99, %97, %cst_68 {dimension_numbers = #tpu.dot_dimension_numbers<[1], [0], [0], [1], [0, 0, 1, 1], [], []>} : vector<8x4xf32>, vector<4x100xf32>, vector<8x100xf32> -> vector<8x100xf32>
    %101 = arith.addf %94, %100 : vector<8x100xf32>
    %102 = vector.extract_strided_slice %96 {offsets = [0, 1], sizes = [4, 100], strides = [1, 1]} : vector<4x122xf32> to vector<4x100xf32>
    %c19 = arith.constant 19 : index
    %c0_69 = arith.constant 0 : index
    %c0_70 = arith.constant 0 : index
    %103 = vector.load %arg5[%c19, %c0_69, %c0_70] : memref<27x8x4xf32, #tpu.memory_space<vmem>>, vector<1x8x4xf32>
    %104 = vector.shape_cast %103 : vector<1x8x4xf32> to vector<8x4xf32>
    %cst_71 = arith.constant dense<0.000000e+00> : vector<8x100xf32>
    %105 = tpu.matmul %104, %102, %cst_71 {dimension_numbers = #tpu.dot_dimension_numbers<[1], [0], [0], [1], [0, 0, 1, 1], [], []>} : vector<8x4xf32>, vector<4x100xf32>, vector<8x100xf32> -> vector<8x100xf32>
    %106 = arith.addf %101, %105 : vector<8x100xf32>
    %107 = vector.extract_strided_slice %96 {offsets = [0, 2], sizes = [4, 100], strides = [1, 1]} : vector<4x122xf32> to vector<4x100xf32>
    %c20 = arith.constant 20 : index
    %c0_72 = arith.constant 0 : index
    %c0_73 = arith.constant 0 : index
    %108 = vector.load %arg5[%c20, %c0_72, %c0_73] : memref<27x8x4xf32, #tpu.memory_space<vmem>>, vector<1x8x4xf32>
    %109 = vector.shape_cast %108 : vector<1x8x4xf32> to vector<8x4xf32>
    %cst_74 = arith.constant dense<0.000000e+00> : vector<8x100xf32>
    %110 = tpu.matmul %109, %107, %cst_74 {dimension_numbers = #tpu.dot_dimension_numbers<[1], [0], [0], [1], [0, 0, 1, 1], [], []>} : vector<8x4xf32>, vector<4x100xf32>, vector<8x100xf32> -> vector<8x100xf32>
    %111 = arith.addf %106, %110 : vector<8x100xf32>
    %112 = vector.extract_strided_slice %96 {offsets = [0, 10], sizes = [4, 100], strides = [1, 1]} : vector<4x122xf32> to vector<4x100xf32>
    %c21 = arith.constant 21 : index
    %c0_75 = arith.constant 0 : index
    %c0_76 = arith.constant 0 : index
    %113 = vector.load %arg5[%c21, %c0_75, %c0_76] : memref<27x8x4xf32, #tpu.memory_space<vmem>>, vector<1x8x4xf32>
    %114 = vector.shape_cast %113 : vector<1x8x4xf32> to vector<8x4xf32>
    %cst_77 = arith.constant dense<0.000000e+00> : vector<8x100xf32>
    %115 = tpu.matmul %114, %112, %cst_77 {dimension_numbers = #tpu.dot_dimension_numbers<[1], [0], [0], [1], [0, 0, 1, 1], [], []>} : vector<8x4xf32>, vector<4x100xf32>, vector<8x100xf32> -> vector<8x100xf32>
    %116 = arith.addf %111, %115 : vector<8x100xf32>
    %117 = vector.extract_strided_slice %96 {offsets = [0, 11], sizes = [4, 100], strides = [1, 1]} : vector<4x122xf32> to vector<4x100xf32>
    %c22 = arith.constant 22 : index
    %c0_78 = arith.constant 0 : index
    %c0_79 = arith.constant 0 : index
    %118 = vector.load %arg5[%c22, %c0_78, %c0_79] : memref<27x8x4xf32, #tpu.memory_space<vmem>>, vector<1x8x4xf32>
    %119 = vector.shape_cast %118 : vector<1x8x4xf32> to vector<8x4xf32>
    %cst_80 = arith.constant dense<0.000000e+00> : vector<8x100xf32>
    %120 = tpu.matmul %119, %117, %cst_80 {dimension_numbers = #tpu.dot_dimension_numbers<[1], [0], [0], [1], [0, 0, 1, 1], [], []>} : vector<8x4xf32>, vector<4x100xf32>, vector<8x100xf32> -> vector<8x100xf32>
    %121 = arith.addf %116, %120 : vector<8x100xf32>
    %122 = vector.extract_strided_slice %96 {offsets = [0, 12], sizes = [4, 100], strides = [1, 1]} : vector<4x122xf32> to vector<4x100xf32>
    %c23 = arith.constant 23 : index
    %c0_81 = arith.constant 0 : index
    %c0_82 = arith.constant 0 : index
    %123 = vector.load %arg5[%c23, %c0_81, %c0_82] : memref<27x8x4xf32, #tpu.memory_space<vmem>>, vector<1x8x4xf32>
    %124 = vector.shape_cast %123 : vector<1x8x4xf32> to vector<8x4xf32>
    %cst_83 = arith.constant dense<0.000000e+00> : vector<8x100xf32>
    %125 = tpu.matmul %124, %122, %cst_83 {dimension_numbers = #tpu.dot_dimension_numbers<[1], [0], [0], [1], [0, 0, 1, 1], [], []>} : vector<8x4xf32>, vector<4x100xf32>, vector<8x100xf32> -> vector<8x100xf32>
    %126 = arith.addf %121, %125 : vector<8x100xf32>
    %127 = vector.extract_strided_slice %96 {offsets = [0, 20], sizes = [4, 100], strides = [1, 1]} : vector<4x122xf32> to vector<4x100xf32>
    %c24 = arith.constant 24 : index
    %c0_84 = arith.constant 0 : index
    %c0_85 = arith.constant 0 : index
    %128 = vector.load %arg5[%c24, %c0_84, %c0_85] : memref<27x8x4xf32, #tpu.memory_space<vmem>>, vector<1x8x4xf32>
    %129 = vector.shape_cast %128 : vector<1x8x4xf32> to vector<8x4xf32>
    %cst_86 = arith.constant dense<0.000000e+00> : vector<8x100xf32>
    %130 = tpu.matmul %129, %127, %cst_86 {dimension_numbers = #tpu.dot_dimension_numbers<[1], [0], [0], [1], [0, 0, 1, 1], [], []>} : vector<8x4xf32>, vector<4x100xf32>, vector<8x100xf32> -> vector<8x100xf32>
    %131 = arith.addf %126, %130 : vector<8x100xf32>
    %132 = vector.extract_strided_slice %96 {offsets = [0, 21], sizes = [4, 100], strides = [1, 1]} : vector<4x122xf32> to vector<4x100xf32>
    %c25 = arith.constant 25 : index
    %c0_87 = arith.constant 0 : index
    %c0_88 = arith.constant 0 : index
    %133 = vector.load %arg5[%c25, %c0_87, %c0_88] : memref<27x8x4xf32, #tpu.memory_space<vmem>>, vector<1x8x4xf32>
    %134 = vector.shape_cast %133 : vector<1x8x4xf32> to vector<8x4xf32>
    %cst_89 = arith.constant dense<0.000000e+00> : vector<8x100xf32>
    %135 = tpu.matmul %134, %132, %cst_89 {dimension_numbers = #tpu.dot_dimension_numbers<[1], [0], [0], [1], [0, 0, 1, 1], [], []>} : vector<8x4xf32>, vector<4x100xf32>, vector<8x100xf32> -> vector<8x100xf32>
    %136 = arith.addf %131, %135 : vector<8x100xf32>
    %137 = vector.extract_strided_slice %96 {offsets = [0, 22], sizes = [4, 100], strides = [1, 1]} : vector<4x122xf32> to vector<4x100xf32>
    %c26 = arith.constant 26 : index
    %c0_90 = arith.constant 0 : index
    %c0_91 = arith.constant 0 : index
    %138 = vector.load %arg5[%c26, %c0_90, %c0_91] : memref<27x8x4xf32, #tpu.memory_space<vmem>>, vector<1x8x4xf32>
    %139 = vector.shape_cast %138 : vector<1x8x4xf32> to vector<8x4xf32>
    %cst_92 = arith.constant dense<0.000000e+00> : vector<8x100xf32>
    %140 = tpu.matmul %139, %137, %cst_92 {dimension_numbers = #tpu.dot_dimension_numbers<[1], [0], [0], [1], [0, 0, 1, 1], [], []>} : vector<8x4xf32>, vector<4x100xf32>, vector<8x100xf32> -> vector<8x100xf32>
    %141 = arith.addf %136, %140 : vector<8x100xf32>
    %c0_93 = arith.constant 0 : index
    %c0_94 = arith.constant 0 : index
    %142 = vector.load %arg6[%c0_93, %c0_94] : memref<8x1xf32, #tpu.memory_space<vmem>>, vector<8x1xf32>
    %143 = vector.broadcast %142 : vector<8x1xf32> to vector<8x100xf32>
    %144 = arith.mulf %141, %143 : vector<8x100xf32>
    %c0_95 = arith.constant 0 : index
    %c0_96 = arith.constant 0 : index
    %145 = vector.load %arg7[%c0_95, %c0_96] : memref<8x1xf32, #tpu.memory_space<vmem>>, vector<8x1xf32>
    %146 = vector.broadcast %145 : vector<8x1xf32> to vector<8x100xf32>
    %147 = arith.addf %144, %146 : vector<8x100xf32>
    %cst_97 = arith.constant 0.000000e+00 : f32
    %148 = vector.broadcast %cst_97 : f32 to vector<8x100xf32>
    %149 = arith.maximumf %147, %148 : vector<8x100xf32>
    %c0_98 = arith.constant 0 : index
    %c0_99 = arith.constant 0 : index
    %c0_100 = arith.constant 0 : index
    %c0_101 = arith.constant 0 : index
    %150 = vector.load %arg8[%c0_98, %c0_99, %c0_100, %c0_101] : memref<1x1x8x100xf32, #tpu.memory_space<vmem>>, vector<1x1x8x100xf32>
    %151 = vector.shape_cast %150 : vector<1x1x8x100xf32> to vector<8x100xf32>
    %152 = vector.shape_cast %149 : vector<8x100xf32> to vector<1x1x8x100xf32>
    tpu.vector_store %arg8[%c0_98, %c0_99, %c0_100, %c0_101], %152 {strides = array<i32>} : memref<1x1x8x100xf32, #tpu.memory_space<vmem>>, vector<1x1x8x100xf32>,
    return
  }
  func.func @transform_0(%arg0: i32, %arg1: i32) -> (i32, i32, i32, i32) {
    %c0_i32 = arith.constant 0 : i32
    %0 = arith.addi %arg1, %c0_i32 : i32
    %c0_i32_0 = arith.constant 0 : i32
    %c0_i32_1 = arith.constant 0 : i32
    %c0_i32_2 = arith.constant 0 : i32
    return %arg0, %0, %c0_i32_0, %c0_i32_1 : i32, i32, i32, i32
  }
  func.func @transform_1(%arg0: i32, %arg1: i32) -> (i32, i32, i32, i32) {
    %c1_i32 = arith.constant 1 : i32
    %0 = arith.addi %arg1, %c1_i32 : i32
    %c0_i32 = arith.constant 0 : i32
    %c0_i32_0 = arith.constant 0 : i32
    %c0_i32_1 = arith.constant 0 : i32
    return %arg0, %0, %c0_i32, %c0_i32_0 : i32, i32, i32, i32
  }
  func.func @transform_2(%arg0: i32, %arg1: i32) -> (i32, i32, i32, i32) {
    %c2_i32 = arith.constant 2 : i32
    %0 = arith.addi %arg1, %c2_i32 : i32
    %c0_i32 = arith.constant 0 : i32
    %c0_i32_0 = arith.constant 0 : i32
    %c0_i32_1 = arith.constant 0 : i32
    return %arg0, %0, %c0_i32, %c0_i32_0 : i32, i32, i32, i32
  }
  func.func @transform_3(%arg0: i32, %arg1: i32) -> (i32, i32, i32) {
    %c0_i32 = arith.constant 0 : i32
    %c0_i32_0 = arith.constant 0 : i32
    %c0_i32_1 = arith.constant 0 : i32
    %c0_i32_2 = arith.constant 0 : i32
    return %c0_i32, %c0_i32_0, %c0_i32_1 : i32, i32, i32
  }
  func.func @transform_4(%arg0: i32, %arg1: i32) -> (i32, i32) {
    %c0_i32 = arith.constant 0 : i32
    %c0_i32_0 = arith.constant 0 : i32
    %c0_i32_1 = arith.constant 0 : i32
    return %c0_i32, %c0_i32_0 : i32, i32
  }
  func.func @transform_5(%arg0: i32, %arg1: i32) -> (i32, i32) {
    %c0_i32 = arith.constant 0 : i32
    %c0_i32_0 = arith.constant 0 : i32
    %c0_i32_1 = arith.constant 0 : i32
    return %c0_i32, %c0_i32_0 : i32, i32
  }
  func.func @transform_6(%arg0: i32, %arg1: i32) -> (i32, i32, i32, i32) {
    %c0_i32 = arith.constant 0 : i32
    %c0_i32_0 = arith.constant 0 : i32
    %c0_i32_1 = arith.constant 0 : i32
    return %arg0, %arg1, %c0_i32, %c0_i32_0 : i32, i32, i32, i32
  }
}

</mosaic_0001>

<bundles_post_ra>
// kernel: tpu_custom_call.1
= control target key start
LH: loop header
LB: loop body
LE: loop exit
PB: predicated region body
PF: predicated region fallthrough
CT: control target
= control target key end

     0   :  { %s3559_s0 = inlined_call_operand.vmem [shape: f32[2,6,4,122], index: 0, kind: input, shape index: {}]   ;;  %s3560_s1 = inlined_call_operand.vmem [shape: f32[2,6,4,122], index: 1, kind: input, shape index: {}]   ;;  %s3561_s2 = inlined_call_operand.vmem [shape: f32[2,6,4,122], index: 2, kind: input, shape index: {}]   ;;  %s3562_s3 = inlined_call_operand.vmem [shape: f32[27,8,4], index: 3, kind: input, shape index: {}]   ;;  %s3563_s4 = inlined_call_operand.vmem [shape: f32[8,1], index: 4, kind: input, shape index: {}]   ;;  %s3564_s5 = inlined_call_operand.vmem [shape: f32[8,1], index: 5, kind: input, shape index: {}]   ;;  %s3565_s6 = inlined_call_operand.hbm [shape: f32[2,4,8,100], index: 6, kind: output, shape index: {}]  }
   0x1   :  { %3574 = sst [smem:[#allocation7_spill]] %s3559_s0 }
   0x2   :  { %3575 = sst [smem:[#allocation8_spill]] %s3560_s1 }
   0x3   :  { %11 = vsyncpa [#allocation3], 0 }
   0x4   :  { %13 = vsyncpa [#allocation3 + $0x1], 0  ;;  %s3166_s21 = smov 0   ;;  %s3168_s22 = smov 0  }
   0x5   :  { %s3170_s23 = smov 0   ;;  %s3172_s24 = smov 0  }
   0x6   :  { %s3174_s25 = smov 0   ;;  %s3176_s26 = smov 0  }
   0x7   :  { %s3178_s27 = smov 0   ;;  %s3180_s28 = smov 0  }
   0x8 LB: > { %s2657_s29 = sadd.s32 4294967295, %s3117_s28   ;;  %s2658_s30 = sadd.s32 4294967294, %s3117_s28   ;;  %s3117_s28 = sphi %s3180_s28, %s19_s28   ;;  %s3113_s27 = sphi %s3178_s27, %s3593_s27   ;;  %s3109_s26 = sphi %s3176_s26, %s3592_s26   ;;  %s3105_s25 = sphi %s3174_s25, %s3591_s25   ;;  %s3101_s24 = sphi %s3172_s24, %s3590_s24   ;;  %s3097_s23 = sphi %s3170_s23, %s3589_s23   ;;  %s3093_s22 = sphi %s3168_s22, %s3588_s22   ;;  %s3089_s21 = sphi %s3166_s21, %s3587_s21  }
   0x9   : > { %s28_s7 = sadd.s32 1, %s3109_s26  ;;  %s31_s8 = sadd.s32 1, %s3113_s27 }
   0xa   : > { %p29_p0 = scmp.ge.s32.totalorder %s28_s7, 4  ;;  %p201_p1 = scmp.ne.s32.totalorder %s3097_s23, %s3093_s22 }
   0xb   : > { %p202_p2 = scmp.eq.s32.totalorder %s2657_s29, 7  ;;  %p207_p5 = scmp.ne.s32.totalorder %s3093_s22, %s3089_s21 }
   0xc   : > { %s3595_s7 = smov (%p29_p0, %s28_s7), 0  ;;  %s3597_s8 = smov (!%p29_p0, %s31_s8), %s3113_s27 }
   0xd   : > { %3576 = sst [smem:[#allocation5_spill]] %s3595_s7  ;;  %s187_s9 = ssub.s32 %s3109_s26, %s3595_s7 }
   0xe   : > { %p3217_p3 = por %p202_p2, %p201_p1  ;;  %p33_p4 = scmp.ge.s32.totalorder %s3597_s8, 2 }
   0xf   : > { %p208_p6 = scmp.eq.s32.totalorder %s2658_s30, 7  ;;  %p2661_p7 = scmp.ge.s32.totalorder %s3117_s28, 1 }
  0x10   : > { %s3599_s8 = smov (%p33_p4, %s3597_s8), 0  ;;  %p272_p9 = scmp.lt.s32.totalorder %s3117_s28, 9 }
  0x11   : > { %3578 = sst [smem:[#allocation6_spill]] %s3599_s8  ;;  %p3226_p8 = por %p208_p6, %p207_p5 }
  0x12   : > { %s186_s12 = ssub.s32 %s3113_s27, %s3599_s8  ;;  %s191_s13 = sadd.s32 1, %s3097_s23 }
  0x13   : > { %s188_s14 = sor.u32 %s187_s9, %s186_s12  ;;  %p273_p10 = pnand %p2661_p7, %p272_p9 }
  0x14   : > { %p189_p11 = scmp.eq.s32.totalorder %s188_s14, 0  ;;  %p323_p12 = scmp.lt.s32.totalorder (!%p273_p10), %s3105_s25, 1 }
  0x15   : > { %276 = sbr.rel (%p273_p10) target bundleno = 416 (0x1a0), region = 44  ;;  %p325_p13 = scmp.lt.s32.totalorder (!%p273_p10), %s3101_s24, 5 }
  0x16   : > { %s3235_s15 = scalar_select %p189_p11, %s3097_s23, %s191_s13  }
  0x17   : > { %s3580_s0 = sld [smem:[#allocation7_spill]] (!%p273_p10)  ;;  %s331_s12 = sadd.s32 (!%p273_p10), 1, %s3101_s24 }
  0x18   : > { %s3569_s8 = smov (!%p273_p10), 127   ;;  %p334_p0 = scmp.lt.s32.totalorder (!%p273_p10), %s331_s12, 5 }
  0x19   : > { %s3125_s30 = smov (!%p273_p10), 116   ;;  %s341_s13 = sadd.s32 (!%p273_p10), 2, %s3101_s24 }
  0x1a   : > { %v3119_v0 = vmov 0.0   ;;  %vm3120_vm0 = vmmov 0   ;;  %s324_s16 = scalar_select %p323_p12, %s3105_s25, 1  ;;  %vm362_vm1 = vcmask 1043456   ;;  %vm358_vm2 = vcmask 31744   ;;  %v352_v2 = vld [vmem:[%s3562_s3] sm:$0xff] }
  0x1b   : > { %2805 = vmatprep.subr.mxu0 %v3119_v0  ;;  %2807 = vmatprep.mubr.msk.f32.mxu0 %vm3120_vm0, %v3119_v0  ;;  %s326_s17 = scalar_select %p325_p13, %s3101_s24, 5  ;;  %v3129_v5 = vmov 0   ;;  %v2510_v6 = vld [vmem:[%s3563_s4] sm:$0xff]  ;;  %v2666_v8 = vld [vmem:[%s3562_s3 + $0x8] sm:$0xff]  ;;  %v2674_v11 = vld [vmem:[%s3562_s3 + $0x18] sm:$0xff]  ;;  %vm2525_vm3 = vcmask 818176  }
  0x1c   : > { %2810 = vmatprep.subr.mxu1 %v3119_v0  ;;  %2812 = vmatprep.mubr.msk.f32.mxu1 %vm3120_vm0, %v3119_v0  ;;  %s3247_s18 = smul.u32 6, %s324_s16  ;;  %s3567_s16 = smov 118   ;;  %v2517_v7 = vld [vmem:[%s3564_s5] sm:$0xff]  ;;  %v2671_v12 = vld [vmem:[%s3562_s3 + $0x10] sm:$0xff]  ;;  %v2680_v16 = vld [vmem:[%s3562_s3 + $0x28] sm:$0xff] }
  0x1d   : > { %s3601_s12 = smov (!%p334_p0, %s331_s12), 5  ;;  %s3581_s1 = sld [smem:[#allocation8_spill]]  ;;  %3023 = vset.pattern.permute.xlu0 %v3129_v5  ;;  %3024 = vset.pattern.permute.xlu1 %v3129_v5  ;;  %v2677_v15 = vld [vmem:[%s3562_s3 + $0x20] sm:$0xff]  ;;  %v2683_v19 = vld [vmem:[%s3562_s3 + $0x30] sm:$0xff]  ;;  %v2686_v20 = vld [vmem:[%s3562_s3 + $0x38] sm:$0xff] }
  0x1e   : > { %s328_s19 = sadd.s32 %s3247_s18, %s326_s17  ;;  %s3123_s17 = smov 126   ;;  %v2689_v23 = vld [vmem:[%s3562_s3 + $0x40] sm:$0xff]  ;;  %v2692_v24 = vld [vmem:[%s3562_s3 + $0x48] sm:$0xff]  ;;  %v2695_v27 = vld [vmem:[%s3562_s3 + $0x50] sm:$0xff] }
  0x1f   : > { %s2663_s20 = sshll.u32 %s328_s19, 2  ;;  %s3572_s19 = smov 117   ;;  %v2698_v28 = vld [vmem:[%s3562_s3 + $0x58] sm:$0xff]  ;;  %v2701_v31 = vld [vmem:[%s3562_s3 + $0x60] sm:$0xff]  ;;  %v2704_v32 = vld [vmem:[%s3562_s3 + $0x68] sm:$0xff] }
  0x20   : > { %s330_s9 = scalar_lea.vmem %s3580_s0, %s2663_s20  ;;  %s337_s20 = sadd.s32 %s3247_s18, %s3601_s12  ;;  %v2707_v35 = vld [vmem:[%s3562_s3 + $0x70] sm:$0xff]  ;;  %v2710_v36 = vld [vmem:[%s3562_s3 + $0x78] sm:$0xff]  ;;  %v2713_v39 = vld [vmem:[%s3562_s3 + $0x80] sm:$0xff] }
  0x21   : > { %v351_v1 = vld [vmem:[%s330_s9] sm:$0xf]  ;;  %s2664_s29 = sshll.u32 %s337_s20, 2  ;;  %s3126_s9 = smov 108   ;;  %v2716_v40 = vld [vmem:[%s3562_s3 + $0x88] sm:$0xff]  ;;  %v2719_v43 = vld [vmem:[%s3562_s3 + $0x90] sm:$0xff] }
  0x22   : > { %356 = vrot.lane.b32.xlu0 %v351_v1, %s3569_s8  ;;  %592 = vrot.lane.b32.xlu1 %v351_v1, %s3567_s16  ;;  %s3127_s0 = smov 107   ;;  %s3128_s7 = smov 106   ;;  %v2722_v44 = vld [vmem:[%s3562_s3 + $0x98] sm:$0xff]  ;;  %v2725_v47 = vld [vmem:[%s3562_s3 + $0xa0] sm:$0xff] }
  0x23   : > { %2811 = vmatpush3.msk.msra.mxu1 %vm362_vm1, %v351_v1  ;;  %s339_s8 = scalar_lea.vmem %s3581_s1, %s2664_s29  ;;  %p344_p1 = scmp.lt.s32.totalorder %s341_s13, 5  ;;  %v2728_v48 = vld [vmem:[%s3562_s3 + $0xa8] sm:$0xff]  ;;  %v2731_v51 = vld [vmem:[%s3562_s3 + $0xb0] sm:$0xff]  ;;  %v2734_v52 = vld [vmem:[%s3562_s3 + $0xb8] sm:$0xff] }
  0x24   : > { %2820 = vmatprep.subr.mxu1 %v3119_v0  ;;  %2813 = vmatmul.mubr.msk.f32.vlgmr.msra.gmra.mxu1 %vm358_vm2, %v352_v2  ;;  %v3271_v3 = vld [vmem:[%s339_s8] sm:$0xf]  ;;  %s3583_s12 = smov 118   ;;  %s3584_s20 = smov 117   ;;  %v2740_v55 = vld [vmem:[%s3562_s3 + $0xc8] sm:$0xff]  ;;  %v2743_v57 = vld [vmem:[%s3562_s3 + $0xd0] sm:$0xff] }
  0x25   : > { %2822 = vmatprep.mubr.msk.f32.mxu1 %vm3120_vm0, %v3119_v0  ;;  %s3603_s13 = smov (!%p344_p1, %s341_s13), 5  ;;  %v2737_v54 = vld [vmem:[%s3562_s3 + $0xc0] sm:$0xff]  ;;  %s2747_s8 = sshll.u32 %s3105_s25, 2 }
  0x26   : > { %512 = vrot.lane.b32.xlu0 %v351_v1, %s3123_s17  ;;  %672 = vrot.lane.b32.xlu1 %v351_v1, %s3572_s19  ;;  %s3582_s19 = smov 127   ;;  %s347_s16 = sadd.s32 %s3247_s18, %s3603_s13 }
  0x27   : > { %s2665_s29 = sshll.u32 %s347_s16, 2  ;;  %s320_s16 = sand.u32 1, %s3093_s22  }
  0x28   : > { %s349_s1 = scalar_lea.vmem %s3561_s2, %s2665_s29  ;;  %s2662_s29 = sshll.u32 %s320_s16, 3 }
  0x29   : > { %v3289_v4 = vld [vmem:[%s349_s1] sm:$0xf]  ;;  %s2539_s14 = sadd.s32 %s3101_s24, %s2747_s8  ;;  %s322_s18 = scalar_lea.vmem [#allocation2], %s2662_s29 }
  0x2a   : > { %752 = vrot.lane.b32.xlu0 %v351_v1, %s3125_s30  ;;  %832 = vrot.lane.b32.xlu1 %v351_v1, %s3126_s9  ;;  %s2748_s1 = sshll.u32 %s2539_s14, 7  ;;  %s2528_s25 = scalar_lea.sflag [#allocation3], %s320_s16 }
  0x2b   : > { %s2541_s13 = scalar_lea.hbm %s3565_s6, %s2748_s1  ;;  %s3130_s24 = smov [#allocation2]  }
  0x2e   : > { %912 = vrot.lane.b32.xlu0 %v351_v1, %s3127_s0  ;;  %992 = vrot.lane.b32.xlu1 %v351_v1, %s3128_s7 }
  0x32   : > { %1152 = vrot.lane.b32.xlu0 %v3271_v3, %s3582_s19  ;;  %1232 = vrot.lane.b32.xlu1 %v3271_v3, %s3123_s17 }
  0x36   : > { %1312 = vrot.lane.b32.xlu0 %v3271_v3, %s3583_s12  ;;  %1392 = vrot.lane.b32.xlu1 %v3271_v3, %s3584_s20 }
  0x3a   : > { %1472 = vrot.lane.b32.xlu0 %v3271_v3, %s3125_s30  ;;  %1552 = vrot.lane.b32.xlu1 %v3271_v3, %s3126_s9 }
  0x3e   : > { %1632 = vrot.lane.b32.xlu0 %v3271_v3, %s3127_s0  ;;  %1712 = vrot.lane.b32.xlu1 %v3271_v3, %s3128_s7 }
  0x42   : > { %1872 = vrot.lane.b32.xlu0 %v3289_v4, %s3582_s19  ;;  %1952 = vrot.lane.b32.xlu1 %v3289_v4, %s3123_s17  ;;  %s2543_s17 = sshll.u32 %s322_s18, 4  ;;  %s2544_s17 = int_to_ptr.vmem [resolvable:$true] %s2543_s17 }
  0x46   : > { %2032 = vrot.lane.b32.xlu0 %v3289_v4, %s3583_s12  ;;  %2112 = vrot.lane.b32.xlu1 %v3289_v4, %s3584_s20 }
  0x4a   : > { %2192 = vrot.lane.b32.xlu0 %v3289_v4, %s3125_s30  ;;  %2272 = vrot.lane.b32.xlu1 %v3289_v4, %s3126_s9  ;;  %s3025_s9 = scalar_lea.vmem %s2544_s17, 128 }
  0x4b   : > { %p3026_p2 = scmp.ne.s32.totalorder %s2544_s17, %s3025_s9 }
  0x4d   : > { %p3027_p4 = pnand %p3026_p2, %p3217_p3 }
  0x4e   : > { %2352 = vrot.lane.b32.xlu0 %v3289_v4, %s3127_s0  ;;  %2432 = vrot.lane.b32.xlu1 %v3289_v4, %s3128_s7  ;;  %s3029_s0 = sshll.u32 %s3130_s24, 4  ;;  %s3030_s0 = int_to_ptr.vmem [resolvable:$false] %s3029_s0 }
  0x4f   : > { %p3028_p5 = pneg %p3027_p4  ;;  %s3031_s7 = scalar_lea.vmem %s3030_s0, 256 }
  0x50   : > { %p3032_p6 = scmp.lt.s32.totalorder %s2544_s17, %s3030_s0  ;;  %p3033_p7 = scmp.lt.s32.totalorder %s3031_s7, %s3025_s9 }
  0x52   : > { %2513 = vperm.xlu0 %3023, %v2510_v6   ;;  %2520 = vperm.xlu1 %3024, %v2517_v7   ;;  %p3034_p9 = por %p3033_p7, %p3032_p6 }
  0x54   : > { %p3035_p10 = pnand %p3034_p9, %p3028_p5 }
  0x94   : > { %v357_v9 = vpop.permute.xlu0 %356  ;;  %v593_v10 = vpop.permute.xlu1 %592 }
  0x95   : > { %2806 = vmatpush3.msk.msra.mxu0 %vm362_vm1, %v357_v9  ;;  %2821 = vmatpush3.msk.msra.mxu1 %vm362_vm1, %v593_v10 }
  0x96   : > { %2808 = vmatmul.mubr.msk.f32.vlgmr.msra.gmra.mxu0 %vm358_vm2, %v2666_v8  ;;  %2815 = vmatprep.subr.mxu0 %v3119_v0 }
  0x97   : > { %2817 = vmatprep.mubr.msk.f32.mxu0 %vm3120_vm0, %v3119_v0  ;;  %2823 = vmatmul.mubr.msk.f32.vlgmr.msra.gmra.mxu1 %vm358_vm2, %v2674_v11 }
  0x98   : > { %v513_v13 = vpop.permute.xlu0 %512  ;;  %v673_v14 = vpop.permute.xlu1 %672  ;;  %2830 = vmatprep.subr.mxu1 %v3119_v0  ;;  %2832 = vmatprep.mubr.msk.f32.mxu1 %vm3120_vm0, %v3119_v0 }
  0x99   : > { %2816 = vmatpush3.msk.msra.mxu0 %vm362_vm1, %v513_v13 }
  0x9a   : > { %2818 = vmatmul.mubr.msk.f32.vlgmr.msra.gmra.mxu0 %vm358_vm2, %v2671_v12  ;;  %2825 = vmatprep.subr.mxu0 %v3119_v0 }
  0x9b   : > { %2826 = vmatpush3.msk.msra.mxu0 %vm362_vm1, %v673_v14  ;;  %2827 = vmatprep.mubr.msk.f32.mxu0 %vm3120_vm0, %v3119_v0 }
  0x9c   : > { %v753_v17 = vpop.permute.xlu0 %752  ;;  %v833_v18 = vpop.permute.xlu1 %832  ;;  %2835 = vmatprep.subr.mxu0 %v3119_v0 }
  0x9d   : > { %2831 = vmatpush3.msk.msra.mxu1 %vm362_vm1, %v753_v17 }
  0x9e   : > { %2828 = vmatmul.mubr.msk.f32.vlgmr.msra.gmra.mxu0 %vm358_vm2, %v2677_v15  ;;  %2833 = vmatmul.mubr.msk.f32.vlgmr.msra.gmra.mxu1 %vm358_vm2, %v2680_v16 }
  0x9f   : > { %2836 = vmatpush3.msk.msra.mxu0 %vm362_vm1, %v833_v18  ;;  %2837 = vmatprep.mubr.msk.f32.mxu0 %vm3120_vm0, %v3119_v0 }
  0xa0   : > { %v913_v21 = vpop.permute.xlu0 %912  ;;  %2840 = vmatprep.subr.mxu1 %v3119_v0  ;;  %v993_v22 = vpop.permute.xlu1 %992  ;;  %2842 = vmatprep.mubr.msk.f32.mxu1 %vm3120_vm0, %v3119_v0 }
  0xa1   : > { %2841 = vmatpush3.msk.msra.mxu1 %vm362_vm1, %v913_v21  ;;  %2845 = vmatprep.subr.mxu0 %v3119_v0 }
  0xa2   : > { %2838 = vmatmul.mubr.msk.f32.vlgmr.msra.gmra.mxu0 %vm358_vm2, %v2683_v19  ;;  %2843 = vmatmul.mubr.msk.f32.vlgmr.msra.gmra.mxu1 %vm358_vm2, %v2686_v20 }
  0xa3   : > { %2846 = vmatpush3.msk.msra.mxu0 %vm362_vm1, %v993_v22  ;;  %2847 = vmatprep.mubr.msk.f32.mxu0 %vm3120_vm0, %v3119_v0 }
  0xa4   : > { %2850 = vmatprep.subr.mxu1 %v3119_v0  ;;  %2855 = vmatprep.subr.mxu0 %v3119_v0  ;;  %v1153_v25 = vpop.permute.xlu0 %1152  ;;  %v1233_v26 = vpop.permute.xlu1 %1232 }
  0xa5   : > { %2851 = vmatpush3.msk.msra.mxu1 %vm362_vm1, %v3271_v3  ;;  %2852 = vmatprep.mubr.msk.f32.mxu1 %vm3120_vm0, %v3119_v0 }
  0xa6   : > { %2848 = vmatmul.mubr.msk.f32.vlgmr.msra.gmra.mxu0 %vm358_vm2, %v2689_v23  ;;  %2853 = vmatmul.mubr.msk.f32.vlgmr.msra.gmra.mxu1 %vm358_vm2, %v2692_v24 }
  0xa7   : > { %2856 = vmatpush3.msk.msra.mxu0 %vm362_vm1, %v1153_v25  ;;  %2857 = vmatprep.mubr.msk.f32.mxu0 %vm3120_vm0, %v3119_v0 }
  0xa8   : > { %2860 = vmatprep.subr.mxu1 %v3119_v0  ;;  %2865 = vmatprep.subr.mxu0 %v3119_v0  ;;  %v1313_v29 = vpop.permute.xlu0 %1312  ;;  %v1393_v30 = vpop.permute.xlu1 %1392 }
  0xa9   : > { %2861 = vmatpush3.msk.msra.mxu1 %vm362_vm1, %v1233_v26  ;;  %2862 = vmatprep.mubr.msk.f32.mxu1 %vm3120_vm0, %v3119_v0 }
  0xaa   : > { %2858 = vmatmul.mubr.msk.f32.vlgmr.msra.gmra.mxu0 %vm358_vm2, %v2695_v27  ;;  %2863 = vmatmul.mubr.msk.f32.vlgmr.msra.gmra.mxu1 %vm358_vm2, %v2698_v28 }
  0xab   : > { %2866 = vmatpush3.msk.msra.mxu0 %vm362_vm1, %v1313_v29  ;;  %2867 = vmatprep.mubr.msk.f32.mxu0 %vm3120_vm0, %v3119_v0 }
  0xac   : > { %2870 = vmatprep.subr.mxu1 %v3119_v0  ;;  %2875 = vmatprep.subr.mxu0 %v3119_v0  ;;  %v1473_v33 = vpop.permute.xlu0 %1472  ;;  %v1553_v34 = vpop.permute.xlu1 %1552 }
  0xad   : > { %2871 = vmatpush3.msk.msra.mxu1 %vm362_vm1, %v1393_v30  ;;  %2872 = vmatprep.mubr.msk.f32.mxu1 %vm3120_vm0, %v3119_v0 }
  0xae   : > { %2868 = vmatmul.mubr.msk.f32.vlgmr.msra.gmra.mxu0 %vm358_vm2, %v2701_v31  ;;  %2873 = vmatmul.mubr.msk.f32.vlgmr.msra.gmra.mxu1 %vm358_vm2, %v2704_v32 }
  0xaf   : > { %2876 = vmatpush3.msk.msra.mxu0 %vm362_vm1, %v1473_v33  ;;  %2877 = vmatprep.mubr.msk.f32.mxu0 %vm3120_vm0, %v3119_v0 }
  0xb0   : > { %2880 = vmatprep.subr.mxu1 %v3119_v0  ;;  %2885 = vmatprep.subr.mxu0 %v3119_v0  ;;  %v1633_v37 = vpop.permute.xlu0 %1632  ;;  %v1713_v38 = vpop.permute.xlu1 %1712 }
  0xb1   : > { %2881 = vmatpush3.msk.msra.mxu1 %vm362_vm1, %v1553_v34  ;;  %2882 = vmatprep.mubr.msk.f32.mxu1 %vm3120_vm0, %v3119_v0 }
  0xb2   : > { %2878 = vmatmul.mubr.msk.f32.vlgmr.msra.gmra.mxu0 %vm358_vm2, %v2707_v35  ;;  %2883 = vmatmul.mubr.msk.f32.vlgmr.msra.gmra.mxu1 %vm358_vm2, %v2710_v36 }
  0xb3   : > { %2886 = vmatpush3.msk.msra.mxu0 %vm362_vm1, %v1633_v37  ;;  %2887 = vmatprep.mubr.msk.f32.mxu0 %vm3120_vm0, %v3119_v0 }
  0xb4   : > { %2890 = vmatprep.subr.mxu1 %v3119_v0  ;;  %2892 = vmatprep.mubr.msk.f32.mxu1 %vm3120_vm0, %v3119_v0  ;;  %v1873_v41 = vpop.permute.xlu0 %1872  ;;  %v1953_v42 = vpop.permute.xlu1 %1952 }
  0xb5   : > { %2891 = vmatpush3.msk.msra.mxu1 %vm362_vm1, %v1713_v38  ;;  %2895 = vmatprep.subr.mxu0 %v3119_v0 }
  0xb6   : > { %2888 = vmatmul.mubr.msk.f32.vlgmr.msra.gmra.mxu0 %vm358_vm2, %v2713_v39  ;;  %2893 = vmatmul.mubr.msk.f32.vlgmr.msra.gmra.mxu1 %vm358_vm2, %v2716_v40 }
  0xb7   : > { %2896 = vmatpush3.msk.msra.mxu0 %vm362_vm1, %v3289_v4  ;;  %2897 = vmatprep.mubr.msk.f32.mxu0 %vm3120_vm0, %v3119_v0 }
  0xb8   : > { %2900 = vmatprep.subr.mxu1 %v3119_v0  ;;  %2902 = vmatprep.mubr.msk.f32.mxu1 %vm3120_vm0, %v3119_v0  ;;  %v2033_v45 = vpop.permute.xlu0 %2032  ;;  %v2113_v46 = vpop.permute.xlu1 %2112 }
  0xb9   : > { %2901 = vmatpush3.msk.msra.mxu1 %vm362_vm1, %v1873_v41  ;;  %2905 = vmatprep.subr.mxu0 %v3119_v0 }
  0xba   : > { %2898 = vmatmul.mubr.msk.f32.vlgmr.msra.gmra.mxu0 %vm358_vm2, %v2719_v43  ;;  %2903 = vmatmul.mubr.msk.f32.vlgmr.msra.gmra.mxu1 %vm358_vm2, %v2722_v44 }
  0xbb   : > { %2906 = vmatpush3.msk.msra.mxu0 %vm362_vm1, %v1953_v42  ;;  %2907 = vmatprep.mubr.msk.f32.mxu0 %vm3120_vm0, %v3119_v0 }
  0xbc   : > { %2910 = vmatprep.subr.mxu1 %v3119_v0  ;;  %2912 = vmatprep.mubr.msk.f32.mxu1 %vm3120_vm0, %v3119_v0  ;;  %v2193_v49 = vpop.permute.xlu0 %2192  ;;  %v2273_v50 = vpop.permute.xlu1 %2272 }
  0xbd   : > { %2911 = vmatpush3.msk.msra.mxu1 %vm362_vm1, %v2033_v45  ;;  %2915 = vmatprep.subr.mxu0 %v3119_v0 }
  0xbe   : > { %2908 = vmatmul.mubr.msk.f32.vlgmr.msra.gmra.mxu0 %vm358_vm2, %v2725_v47  ;;  %2913 = vmatmul.mubr.msk.f32.vlgmr.msra.gmra.mxu1 %vm358_vm2, %v2728_v48 }
  0xbf   : > { %2916 = vmatpush3.msk.msra.mxu0 %vm362_vm1, %v2113_v46  ;;  %2917 = vmatprep.mubr.msk.f32.mxu0 %vm3120_vm0, %v3119_v0 }
  0xc0   : > { %2920 = vmatprep.subr.mxu1 %v3119_v0  ;;  %2922 = vmatprep.mubr.msk.f32.mxu1 %vm3120_vm0, %v3119_v0  ;;  %v2353_v53 = vpop.permute.xlu0 %2352  ;;  %v2433_v56 = vpop.permute.xlu1 %2432 }
  0xc1   : > { %2921 = vmatpush3.msk.msra.mxu1 %vm362_vm1, %v2193_v49  ;;  %2925 = vmatprep.subr.mxu0 %v3119_v0 }
  0xc2   : > { %2918 = vmatmul.mubr.msk.f32.vlgmr.msra.gmra.mxu0 %vm358_vm2, %v2731_v51  ;;  %2923 = vmatmul.mubr.msk.f32.vlgmr.msra.gmra.mxu1 %vm358_vm2, %v2734_v52 }
  0xc3   : > { %2926 = vmatpush3.msk.msra.mxu0 %vm362_vm1, %v2273_v50  ;;  %2927 = vmatprep.mubr.msk.f32.mxu0 %vm3120_vm0, %v3119_v0 }
  0xc4   : > { %2930 = vmatprep.subr.mxu1 %v3119_v0  ;;  %2932 = vmatprep.mubr.msk.f32.mxu1 %vm3120_vm0, %v3119_v0 }
  0xc5   : > { %2931 = vmatpush3.msk.msra.mxu1 %vm362_vm1, %v2353_v53  ;;  %2935 = vmatprep.subr.mxu0 %v3119_v0 }
  0xc6   : > { %2928 = vmatmul.mubr.msk.f32.vlgmr.msra.gmra.mxu0 %vm358_vm2, %v2737_v54  ;;  %2933 = vmatmul.mubr.msk.f32.vlgmr.msra.gmra.mxu1 %vm358_vm2, %v2740_v55 }
  0xc7   : > { %2936 = vmatpush3.msk.msra.mxu0 %vm362_vm1, %v2433_v56  ;;  %2937 = vmatprep.mubr.msk.f32.mxu0 %vm3120_vm0, %v3119_v0 }
  0xca   : > { %2938 = vmatmul.mubr.msk.f32.vlgmr.msra.gmra.mxu0 %vm358_vm2, %v2743_v57 }
  0xe4   : > { %v506_v58 = vpop.f32.mrf.mxu1 }
  0xe6   : > { %v2814_v59 = vpop.f32.mrf.mxu1 }
 0x156   : > { %v431_v60 = vpop.f32.mrf.mxu0 }
 0x157   : > { %v665_v61 = vpop.f32.mrf.mxu1  ;;  %v507_v63 = vadd.f32 %v506_v58, %v431_v60 }
 0x158   : > { %v2809_v62 = vpop.f32.mrf.mxu0 }
 0x159   : > { %v2824_v1 = vpop.f32.mrf.mxu1 }
 0x15a   : > { %v585_v2 = vpop.f32.mrf.mxu0 }
 0x15b   : > { %v589_v3 = vadd.f32 %v585_v2, %v507_v63 }
 0x15c   : > { %v2819_v4 = vpop.f32.mrf.mxu0 }
 0x15d   : > { %v669_v5 = vadd.f32 %v665_v61, %v589_v3 }
 0x15e   : > { %v745_v6 = vpop.f32.mrf.mxu0  ;;  %v825_v7 = vpop.f32.mrf.mxu1 }
 0x15f   : > { %v749_v0 = vadd.f32 %v745_v6, %v669_v5 }
 0x160   : > { %v2829_v8 = vpop.f32.mrf.mxu0  ;;  %v2834_v9 = vpop.f32.mrf.mxu1 }
 0x161   : > { %v829_v10 = vadd.f32 %v825_v7, %v749_v0  ;;  %v2514_v8 = vpop.permute.xlu0 %2513 }
 0x162   : > { %v905_v11 = vpop.f32.mrf.mxu0  ;;  %v985_v12 = vpop.f32.mrf.mxu1 }
 0x163   : > { %v909_v13 = vadd.f32 %v905_v11, %v829_v10  ;;  %v2521_v11 = vpop.permute.xlu1 %2520 }
 0x164   : > { %v2839_v14 = vpop.f32.mrf.mxu0  ;;  %v2844_v15 = vpop.f32.mrf.mxu1 }
 0x165   : > { %v989_v16 = vadd.f32 %v985_v12, %v909_v13 }
 0x166   : > { %v1065_v17 = vpop.f32.mrf.mxu0  ;;  %v1145_v18 = vpop.f32.mrf.mxu1 }
 0x167   : > { %v1069_v19 = vadd.f32 %v1065_v17, %v989_v16 }
 0x168   : > { %v2849_v20 = vpop.f32.mrf.mxu0  ;;  %v2854_v21 = vpop.f32.mrf.mxu1 }
 0x169   : > { %v1149_v22 = vadd.f32 %v1145_v18, %v1069_v19 }
 0x16a   : > { %v1225_v23 = vpop.f32.mrf.mxu0  ;;  %v1305_v24 = vpop.f32.mrf.mxu1 }
 0x16b   : > { %v1229_v25 = vadd.f32 %v1225_v23, %v1149_v22 }
 0x16c   : > { %v2859_v26 = vpop.f32.mrf.mxu0  ;;  %v2864_v27 = vpop.f32.mrf.mxu1 }
 0x16d   : > { %v1309_v28 = vadd.f32 %v1305_v24, %v1229_v25 }
 0x16e   : > { %v1385_v29 = vpop.f32.mrf.mxu0  ;;  %v1465_v30 = vpop.f32.mrf.mxu1 }
 0x16f   : > { %v1389_v31 = vadd.f32 %v1385_v29, %v1309_v28 }
 0x170   : > { %v2869_v32 = vpop.f32.mrf.mxu0  ;;  %v2874_v33 = vpop.f32.mrf.mxu1 }
 0x171   : > { %v1469_v34 = vadd.f32 %v1465_v30, %v1389_v31 }
 0x172   : > { %v1545_v35 = vpop.f32.mrf.mxu0  ;;  %v1625_v36 = vpop.f32.mrf.mxu1 }
 0x173   : > { %v1549_v37 = vadd.f32 %v1545_v35, %v1469_v34 }
 0x174   : > { %v2879_v38 = vpop.f32.mrf.mxu0  ;;  %v2884_v39 = vpop.f32.mrf.mxu1 }
 0x175   : > { %v1629_v40 = vadd.f32 %v1625_v36, %v1549_v37 }
 0x176   : > { %v1705_v41 = vpop.f32.mrf.mxu0  ;;  %v1785_v42 = vpop.f32.mrf.mxu1 }
 0x177   : > { %v1709_v43 = vadd.f32 %v1705_v41, %v1629_v40 }
 0x178   : > { %v2889_v44 = vpop.f32.mrf.mxu0  ;;  %v2894_v45 = vpop.f32.mrf.mxu1 }
 0x179   : > { %v1789_v46 = vadd.f32 %v1785_v42, %v1709_v43 }
 0x17a   : > { %v1865_v47 = vpop.f32.mrf.mxu0  ;;  %v1945_v48 = vpop.f32.mrf.mxu1 }
 0x17b   : > { %v1869_v49 = vadd.f32 %v1865_v47, %v1789_v46 }
 0x17c   : > { %v2899_v50 = vpop.f32.mrf.mxu0  ;;  %v2904_v51 = vpop.f32.mrf.mxu1 }
 0x17d   : > { %v1949_v52 = vadd.f32 %v1945_v48, %v1869_v49 }
 0x17e   : > { %v2025_v53 = vpop.f32.mrf.mxu0  ;;  %v2105_v54 = vpop.f32.mrf.mxu1 }
 0x17f   : > { %v2029_v55 = vadd.f32 %v2025_v53, %v1949_v52 }
 0x180   : > { %v2909_v56 = vpop.f32.mrf.mxu0  ;;  %v2914_v57 = vpop.f32.mrf.mxu1 }
 0x181   : > { %v2109_v58 = vadd.f32 %v2105_v54, %v2029_v55 }
 0x182   : > { %v2185_v59 = vpop.f32.mrf.mxu0  ;;  %v2265_v60 = vpop.f32.mrf.mxu1 }
 0x183   : > { %v2189_v61 = vadd.f32 %v2185_v59, %v2109_v58 }
 0x184   : > { %v2919_v62 = vpop.f32.mrf.mxu0  ;;  %v2924_v63 = vpop.f32.mrf.mxu1 }
 0x185   : > { %v2269_v1 = vadd.f32 %v2265_v60, %v2189_v61 }
 0x186   : > { %v2345_v2 = vpop.f32.mrf.mxu0  ;;  %v2425_v3 = vpop.f32.mrf.mxu1 }
 0x187   : > { %v2349_v4 = vadd.f32 %v2345_v2, %v2269_v1 }
 0x188   : > { %v2929_v5 = vpop.f32.mrf.mxu0  ;;  %v2934_v6 = vpop.f32.mrf.mxu1 }
 0x189   : > { %v2429_v7 = vadd.f32 %v2425_v3, %v2349_v4 }
 0x18a   : > { %v2505_v0 = vpop.f32.mrf.mxu0 }
 0x18b   : > { %v2509_v9 = vadd.f32 %v2505_v0, %v2429_v7 }
 0x18c   : > { %v2939_v10 = vpop.f32.mrf.mxu0 }
 0x18d   : > { %v2516_v12 = vmul.f32 %v2514_v8, %v2509_v9 }
 0x18f   : > { %v2523_v13 = vadd.f32 %v2521_v11, %v2516_v12 }
 0x191   : > { %v2524_v14 = vmax.f32 %v2523_v13, 0.0 }
 0x193   : > { %2526 = vst.msk [vmem:[%s322_s18] sm:$0xff] %vm2525_vm3, %v2524_v14 }
 0x194   : > { %3038 = shalt.err (!%p3035_p10)
}
 0x195   : > { %s3039_s12 = scalar_lea.hbm %s2541_s13, 128  ;;  %s3043_s29 = scalar_lea.hbm %s3565_s6, 1024 }
 0x196   : > { %p3040_p11 = scmp.ne.s32.totalorder %s2541_s13, %s3039_s12  ;;  %p3044_p0 = scmp.lt.s32.totalorder %s2541_s13, %s3565_s6 }
 0x197   : > { %p3045_p1 = scmp.lt.s32.totalorder %s3043_s29, %s3039_s12 }
 0x198   : > { %p3041_p12 = pnand %p3040_p11, %p3217_p3 }
 0x199   : > { %p3046_p2 = por %p3045_p1, %p3044_p0 }
 0x19a   : > { %p3042_p13 = pneg %p3041_p12 }
 0x19c   : > { %p3047_p4 = pnand %p3046_p2, %p3042_p13 }
 0x19e   : > { %3050 = shalt.err (!%p3047_p4)
}
 0x19f   : > { %2941 = dma.vmem_to_hbm [thread:$0]  (%p3217_p3), %s2544_s17, 128, %s2541_s13, %s2528_s25  }
 0x1a0 PF: > { %p2947_p5 = scmp.ge.s32.totalorder %s3117_s28, 2  ;;  %s2555_s1 = sand.u32 1, %s3089_s21  }
 0x1a1   : > { %s2556_s18 = scalar_lea.sflag [#allocation3], %s2555_s1 }
 0x1a2   : > { %p2944_p6 = pnand %p2947_p5, %p3226_p8 }
 0x1a4   : > { %p2945_p7 = pneg %p2944_p6 }
 0x1a6   : > { %3084 = dma.done.wait (%p2945_p7), %s2556_s18, 128  }
 0x1a7   : > { %3086 = vsyncadd (%p2945_p7), %s2556_s18, 4294967168  ;;  %s19_s28 = sadd.s32 1, %s3117_s28   ;;  %s3585_s10 = sld [smem:[#allocation5_spill]] }
 0x1a8   : > { %p16_p9 = scmp.ge.s32.totalorder %s19_s28, 10   ;;  %s3586_s17 = sld [smem:[#allocation6_spill]] }
 0x1a9   : > { %s3587_s21 = smov %s3093_s22  ;;  %s3588_s22 = smov %s3097_s23 }
 0x1aa   : > { %s3589_s23 = smov %s3235_s15  ;;  %s3590_s24 = smov %s3109_s26 }
 0x1ab   : > { %s3591_s25 = smov %s3113_s27  ;;  %18 = sbr.rel (!%p16_p9) target bundleno = 8 (0x8), region = 111 }
 0x1ad   : > { %s3592_s26 = smov %s3585_s10 }
 0x1ae   : > { %s3593_s27 = smov %s3586_s17 }
 0x1b0   :  { %2561 = vsyncpa [#allocation3], 1 }
 0x1b1   :  { %2563 = vsyncpa [#allocation3 + $0x1], 1 }

</bundles_post_ra>
